<compile_context>
chip_gen: v7x
topology: tpu7x:2x2x1
jax: 0.10.0
libtpu: 0.0.40
codegen_flags: <defaults>
</compile_context>

<pallas_src>
import functools

import jax
import jax.numpy as jnp
from jax.experimental import pallas as pl
from jax.experimental.pallas import tpu as pltpu

IN_DIM = 784
HID = 64
OUT_DIM = 10
OUT_PAD = 128     # lane-dense output block


def _round_up(n, m):
    return ((n + m - 1) // m) * m


def mlp_kernel(x_ref, w1_ref, b1_ref, w2_ref, b2_ref,
               w3_ref, b3_ref, w4_ref, b4_ref, o_ref):
    # x tile: (TB, 784) f32 straight from HBM; cast to bf16 in-kernel (VPU has
    # huge slack in this DMA-bound kernel).  Weights bf16, biases f32,
    # accumulate f32 on the MXU.
    x = x_ref[...].astype(jnp.bfloat16)

    h = jnp.dot(x, w1_ref[...], preferred_element_type=jnp.float32) + b1_ref[...]
    h = jnp.maximum(h, 0.0)

    h = jnp.dot(h.astype(jnp.bfloat16), w2_ref[...],
                preferred_element_type=jnp.float32) + b2_ref[...]
    h = jnp.maximum(h, 0.0)

    h = jnp.dot(h.astype(jnp.bfloat16), w3_ref[...],
                preferred_element_type=jnp.float32) + b3_ref[...]
    h = jnp.maximum(h, 0.0)

    logits = jnp.dot(h.astype(jnp.bfloat16), w4_ref[...],
                     preferred_element_type=jnp.float32) + b4_ref[...]
    # logits: (TB, OUT_PAD); lanes >= OUT_DIM are padding -> mask to -inf so
    # they contribute nothing to max / logsumexp.
    lane = jax.lax.broadcasted_iota(jnp.int32, logits.shape, dimension=1)
    logits = jnp.where(lane < OUT_DIM, logits, jnp.float32(-1e30))

    # Numerically stable log_softmax over the class axis (row-wise only, so
    # garbage rows in a boundary tile never contaminate valid rows).
    m = jnp.max(logits, axis=1, keepdims=True)
    z = logits - m
    lse = jnp.log(jnp.sum(jnp.exp(z), axis=1, keepdims=True))
    o_ref[...] = z - lse


def prepare_params(params):
    """Pad layer-4 N to 128 lanes; cast weights to bf16.  w1 stays (784, 64)."""
    w1, b1, w2, b2, w3, b3, w4, b4 = params

    w4p = jnp.zeros((HID, OUT_PAD), jnp.float32).at[:, :OUT_DIM].set(w4)
    b4p = jnp.zeros((1, OUT_PAD), jnp.float32).at[:, :OUT_DIM].set(b4)

    bf = jnp.bfloat16
    return (w1.astype(bf), b1,
            w2.astype(bf), b2,
            w3.astype(bf), b3,
            w4p.astype(bf), b4p)


@functools.partial(jax.jit, static_argnames=("block_b",))
def net_forward(x, prepped_params, block_b=2048):
    w1, b1, w2, b2, w3, b3, w4, b4 = prepped_params
    B = x.shape[0]

    # Batch tile: multiple of 8 (f32 sublane), clamped to the batch.
    TB = min(block_b, _round_up(B, 8))
    # v7x has 2 TensorCores: when the batch is big enough to split without
    # tiny tiles, make sure the "parallel" batch axis has >= 2 grid steps.
    if pl.cdiv(B, TB) < 2 and B >= 2048:
        TB = _round_up(pl.cdiv(B, 2), 8)
    nb = pl.cdiv(B, TB)

    def resident(shape):
        nd = len(shape)
        return pl.BlockSpec(shape, lambda i, _nd=nd: (0,) * _nd)

    out = pl.pallas_call(
        mlp_kernel,
        out_shape=jax.ShapeDtypeStruct((B, OUT_PAD), jnp.float32),
        grid=(nb,),
        in_specs=[
            pl.BlockSpec((TB, IN_DIM), lambda i: (i, 0)),    # x: streamed tile
            resident(w1.shape), resident(b1.shape),           # weights/biases:
            resident(w2.shape), resident(b2.shape),           # VMEM-resident
            resident(w3.shape), resident(b3.shape),
            resident(w4.shape), resident(b4.shape),
        ],
        out_specs=pl.BlockSpec((TB, OUT_PAD), lambda i: (i, 0)),
        compiler_params=pltpu.CompilerParams(
            dimension_semantics=("parallel",),
            vmem_limit_bytes=48 * 1024 * 1024),
    )(x, w1, b1, w2, b2, w3, b3, w4, b4)

    # Class slice; in production this would be fused into the consumer
    # (e.g. the NLL gather) instead of being a standalone op.
    return out[:, :OUT_DIM]


def init_params(key):
    # PyTorch nn.Linear default init: U(-1/sqrt(fan_in), 1/sqrt(fan_in)),
    # stored here as (in, out) so y = x @ W + b.
    def linear(key, fan_in, fan_out):
        kw, kb = jax.random.split(key)
        bound = 1.0 / jnp.sqrt(fan_in)
        w = jax.random.uniform(kw, (fan_in, fan_out), jnp.float32, -bound, bound)
        b = jax.random.uniform(kb, (1, fan_out), jnp.float32, -bound, bound)
        return w, b

    k1, k2, k3, k4 = jax.random.split(key, 4)
    w1, b1 = linear(k1, IN_DIM, HID)
    w2, b2 = linear(k2, HID, HID)
    w3, b3 = linear(k3, HID, HID)
    w4, b4 = linear(k4, HID, OUT_DIM)
    return (w1, b1, w2, b2, w3, b3, w4, b4)


def ref_forward(x, params):
    # Pure-JAX reference mirroring the kernel's mixed precision
    # (bf16 MXU inputs, f32 accumulation).
    w1, b1, w2, b2, w3, b3, w4, b4 = params
    r = lambda a: a.astype(jnp.bfloat16).astype(jnp.float32)
    hp = jax.lax.Precision.HIGHEST
    h = jnp.maximum(jnp.dot(r(x), r(w1), precision=hp) + b1, 0.0)
    h = jnp.maximum(jnp.dot(r(h), r(w2), precision=hp) + b2, 0.0)
    h = jnp.maximum(jnp.dot(r(h), r(w3), precision=hp) + b3, 0.0)
    logits = jnp.dot(r(h), r(w4), precision=hp) + b4
    return jax.nn.log_softmax(logits, axis=1)


if __name__ == "__main__":
    key = jax.random.PRNGKey(0)
    kx, kp = jax.random.split(key)

    B = 8
    x = jax.random.normal(kx, (B, IN_DIM), dtype=jnp.float32)
    params = init_params(kp)
    prepped = prepare_params(params)

    out = net_forward(x, prepped)
    out = jax.block_until_ready(out)

    ref = ref_forward(x, params)

    assert out.shape == (B, OUT_DIM)
    assert jnp.allclose(out, ref, atol=2e-3, rtol=2e-3), (
        float(jnp.max(jnp.abs(out - ref))))
    print("KERNEL_OK")
</pallas_src>

<mosaic_0001>
module attributes {stable_mosaic.version = 11 : i64} {
  func.func @mlp_kernel(%arg0: i32, %arg1: memref<8x784xf32, #tpu.memory_space<vmem>>, %arg2: memref<784x64xbf16, #tpu.memory_space<vmem>>, %arg3: memref<1x64xf32, #tpu.memory_space<vmem>>, %arg4: memref<64x64xbf16, #tpu.memory_space<vmem>>, %arg5: memref<1x64xf32, #tpu.memory_space<vmem>>, %arg6: memref<64x64xbf16, #tpu.memory_space<vmem>>, %arg7: memref<1x64xf32, #tpu.memory_space<vmem>>, %arg8: memref<64x128xbf16, #tpu.memory_space<vmem>>, %arg9: memref<1x128xf32, #tpu.memory_space<vmem>>, %arg10: memref<8x128xf32, #tpu.memory_space<vmem>>) attributes {dimension_semantics = [#tpu.dimension_semantics<parallel>], iteration_bounds = array<i64: 1>, scalar_prefetch = 0 : i64, scratch_operands = 0 : i64, tpu.core_type = #tpu.core_type<tc>, window_params = [{transform_indices = @transform_0, window_bounds = array<i64: 8, 784>}, {pipeline_mode = #tpu.pipeline_mode<synchronous>, transform_indices = @transform_1, window_bounds = array<i64: 784, 64>}, {pipeline_mode = #tpu.pipeline_mode<synchronous>, transform_indices = @transform_2, window_bounds = array<i64: 1, 64>}, {pipeline_mode = #tpu.pipeline_mode<synchronous>, transform_indices = @transform_3, window_bounds = array<i64: 64, 64>}, {pipeline_mode = #tpu.pipeline_mode<synchronous>, transform_indices = @transform_4, window_bounds = array<i64: 1, 64>}, {pipeline_mode = #tpu.pipeline_mode<synchronous>, transform_indices = @transform_5, window_bounds = array<i64: 64, 64>}, {pipeline_mode = #tpu.pipeline_mode<synchronous>, transform_indices = @transform_6, window_bounds = array<i64: 1, 64>}, {pipeline_mode = #tpu.pipeline_mode<synchronous>, transform_indices = @transform_7, window_bounds = array<i64: 64, 128>}, {pipeline_mode = #tpu.pipeline_mode<synchronous>, transform_indices = @transform_8, window_bounds = array<i64: 1, 128>}, {transform_indices = @transform_9, window_bounds = array<i64: 8, 128>}]} {
    %c0 = arith.constant 0 : index
    %c0_0 = arith.constant 0 : index
    %0 = vector.load %arg1[%c0, %c0_0] : memref<8x784xf32, #tpu.memory_space<vmem>>, vector<8x784xf32>
    %1 = arith.truncf %0 : vector<8x784xf32> to vector<8x784xbf16>
    %c0_1 = arith.constant 0 : index
    %c0_2 = arith.constant 0 : index
    %2 = vector.load %arg2[%c0_1, %c0_2] : memref<784x64xbf16, #tpu.memory_space<vmem>>, vector<784x64xbf16>
    %cst = arith.constant dense<0.000000e+00> : vector<8x64xf32>
    %3 = tpu.matmul %1, %2, %cst {dimension_numbers = #tpu.dot_dimension_numbers<[1], [0], [0], [1], [0, 0, 1, 1], [], []>} : vector<8x784xbf16>, vector<784x64xbf16>, vector<8x64xf32> -> vector<8x64xf32>
    %c0_3 = arith.constant 0 : index
    %c0_4 = arith.constant 0 : index
    %4 = vector.load %arg3[%c0_3, %c0_4] : memref<1x64xf32, #tpu.memory_space<vmem>>, vector<1x64xf32>
    %5 = vector.broadcast %4 : vector<1x64xf32> to vector<8x64xf32>
    %6 = arith.addf %3, %5 : vector<8x64xf32>
    %cst_5 = arith.constant 0.000000e+00 : f32
    %7 = vector.broadcast %cst_5 : f32 to vector<8x64xf32>
    %8 = arith.maximumf %6, %7 : vector<8x64xf32>
    %9 = arith.truncf %8 : vector<8x64xf32> to vector<8x64xbf16>
    %c0_6 = arith.constant 0 : index
    %c0_7 = arith.constant 0 : index
    %10 = vector.load %arg4[%c0_6, %c0_7] : memref<64x64xbf16, #tpu.memory_space<vmem>>, vector<64x64xbf16>
    %cst_8 = arith.constant dense<0.000000e+00> : vector<8x64xf32>
    %11 = tpu.matmul %9, %10, %cst_8 {dimension_numbers = #tpu.dot_dimension_numbers<[1], [0], [0], [1], [0, 0, 1, 1], [], []>} : vector<8x64xbf16>, vector<64x64xbf16>, vector<8x64xf32> -> vector<8x64xf32>
    %c0_9 = arith.constant 0 : index
    %c0_10 = arith.constant 0 : index
    %12 = vector.load %arg5[%c0_9, %c0_10] : memref<1x64xf32, #tpu.memory_space<vmem>>, vector<1x64xf32>
    %13 = vector.broadcast %12 : vector<1x64xf32> to vector<8x64xf32>
    %14 = arith.addf %11, %13 : vector<8x64xf32>
    %cst_11 = arith.constant 0.000000e+00 : f32
    %15 = vector.broadcast %cst_11 : f32 to vector<8x64xf32>
    %16 = arith.maximumf %14, %15 : vector<8x64xf32>
    %17 = arith.truncf %16 : vector<8x64xf32> to vector<8x64xbf16>
    %c0_12 = arith.constant 0 : index
    %c0_13 = arith.constant 0 : index
    %18 = vector.load %arg6[%c0_12, %c0_13] : memref<64x64xbf16, #tpu.memory_space<vmem>>, vector<64x64xbf16>
    %cst_14 = arith.constant dense<0.000000e+00> : vector<8x64xf32>
    %19 = tpu.matmul %17, %18, %cst_14 {dimension_numbers = #tpu.dot_dimension_numbers<[1], [0], [0], [1], [0, 0, 1, 1], [], []>} : vector<8x64xbf16>, vector<64x64xbf16>, vector<8x64xf32> -> vector<8x64xf32>
    %c0_15 = arith.constant 0 : index
    %c0_16 = arith.constant 0 : index
    %20 = vector.load %arg7[%c0_15, %c0_16] : memref<1x64xf32, #tpu.memory_space<vmem>>, vector<1x64xf32>
    %21 = vector.broadcast %20 : vector<1x64xf32> to vector<8x64xf32>
    %22 = arith.addf %19, %21 : vector<8x64xf32>
    %cst_17 = arith.constant 0.000000e+00 : f32
    %23 = vector.broadcast %cst_17 : f32 to vector<8x64xf32>
    %24 = arith.maximumf %22, %23 : vector<8x64xf32>
    %25 = arith.truncf %24 : vector<8x64xf32> to vector<8x64xbf16>
    %c0_18 = arith.constant 0 : index
    %c0_19 = arith.constant 0 : index
    %26 = vector.load %arg8[%c0_18, %c0_19] : memref<64x128xbf16, #tpu.memory_space<vmem>>, vector<64x128xbf16>
    %cst_20 = arith.constant dense<0.000000e+00> : vector<8x128xf32>
    %27 = tpu.matmul %25, %26, %cst_20 {dimension_numbers = #tpu.dot_dimension_numbers<[1], [0], [0], [1], [0, 0, 1, 1], [], []>} : vector<8x64xbf16>, vector<64x128xbf16>, vector<8x128xf32> -> vector<8x128xf32>
    %c0_21 = arith.constant 0 : index
    %c0_22 = arith.constant 0 : index
    %28 = vector.load %arg9[%c0_21, %c0_22] : memref<1x128xf32, #tpu.memory_space<vmem>>, vector<1x128xf32>
    %29 = vector.broadcast %28 : vector<1x128xf32> to vector<8x128xf32>
    %30 = arith.addf %27, %29 : vector<8x128xf32>
    %31 = tpu.iota {dimensions = array<i32: 1>} : vector<8x128xi32>
    %c10_i32 = arith.constant 10 : i32
    %32 = vector.broadcast %c10_i32 : i32 to vector<8x128xi32>
    %33 = arith.cmpi slt, %31, %32 : vector<8x128xi32>
    %cst_23 = arith.constant -1.000000e+30 : f32
    %34 = vector.broadcast %cst_23 : f32 to vector<8x128xf32>
    %35 = arith.select %33, %30, %34 : vector<8x128xi1>, vector<8x128xf32>
    %cst_24 = arith.constant dense<0xFF800000> : vector<8xf32>
    %36 = vector.multi_reduction <maximumf>, %35, %cst_24 [1] : vector<8x128xf32> to vector<8xf32>
    %37 = vector.shape_cast %36 : vector<8xf32> to vector<8x1xf32>
    %38 = vector.broadcast %37 : vector<8x1xf32> to vector<8x128xf32>
    %39 = arith.subf %35, %38 : vector<8x128xf32>
    %40 = math.exp %39 : vector<8x128xf32>
    %cst_25 = arith.constant dense<0.000000e+00> : vector<8xf32>
    %41 = vector.multi_reduction <add>, %40, %cst_25 [1] : vector<8x128xf32> to vector<8xf32>
    %42 = vector.shape_cast %41 : vector<8xf32> to vector<8x1xf32>
    %43 = math.log %42 : vector<8x1xf32>
    %44 = vector.broadcast %43 : vector<8x1xf32> to vector<8x128xf32>
    %45 = arith.subf %39, %44 : vector<8x128xf32>
    %c0_26 = arith.constant 0 : index
    %c0_27 = arith.constant 0 : index
    %46 = vector.load %arg10[%c0_26, %c0_27] : memref<8x128xf32, #tpu.memory_space<vmem>>, vector<8x128xf32>
    tpu.vector_store %arg10[%c0_26, %c0_27], %45 {strides = array<i32>} : memref<8x128xf32, #tpu.memory_space<vmem>>, vector<8x128xf32>,
    return
  }
  func.func @transform_0(%arg0: i32) -> (i32, i32) {
    %c0_i32 = arith.constant 0 : i32
    %c0_i32_0 = arith.constant 0 : i32
    return %arg0, %c0_i32 : i32, i32
  }
  func.func @transform_1(%arg0: i32) -> (i32, i32) {
    %c0_i32 = arith.constant 0 : i32
    %c0_i32_0 = arith.constant 0 : i32
    %c0_i32_1 = arith.constant 0 : i32
    return %c0_i32, %c0_i32_0 : i32, i32
  }
  func.func @transform_2(%arg0: i32) -> (i32, i32) {
    %c0_i32 = arith.constant 0 : i32
    %c0_i32_0 = arith.constant 0 : i32
    %c0_i32_1 = arith.constant 0 : i32
    return %c0_i32, %c0_i32_0 : i32, i32
  }
  func.func @transform_3(%arg0: i32) -> (i32, i32) {
    %c0_i32 = arith.constant 0 : i32
    %c0_i32_0 = arith.constant 0 : i32
    %c0_i32_1 = arith.constant 0 : i32
    return %c0_i32, %c0_i32_0 : i32, i32
  }
  func.func @transform_4(%arg0: i32) -> (i32, i32) {
    %c0_i32 = arith.constant 0 : i32
    %c0_i32_0 = arith.constant 0 : i32
    %c0_i32_1 = arith.constant 0 : i32
    return %c0_i32, %c0_i32_0 : i32, i32
  }
  func.func @transform_5(%arg0: i32) -> (i32, i32) {
    %c0_i32 = arith.constant 0 : i32
    %c0_i32_0 = arith.constant 0 : i32
    %c0_i32_1 = arith.constant 0 : i32
    return %c0_i32, %c0_i32_0 : i32, i32
  }
  func.func @transform_6(%arg0: i32) -> (i32, i32) {
    %c0_i32 = arith.constant 0 : i32
    %c0_i32_0 = arith.constant 0 : i32
    %c0_i32_1 = arith.constant 0 : i32
    return %c0_i32, %c0_i32_0 : i32, i32
  }
  func.func @transform_7(%arg0: i32) -> (i32, i32) {
    %c0_i32 = arith.constant 0 : i32
    %c0_i32_0 = arith.constant 0 : i32
    %c0_i32_1 = arith.constant 0 : i32
    return %c0_i32, %c0_i32_0 : i32, i32
  }
  func.func @transform_8(%arg0: i32) -> (i32, i32) {
    %c0_i32 = arith.constant 0 : i32
    %c0_i32_0 = arith.constant 0 : i32
    %c0_i32_1 = arith.constant 0 : i32
    return %c0_i32, %c0_i32_0 : i32, i32
  }
  func.func @transform_9(%arg0: i32) -> (i32, i32) {
    %c0_i32 = arith.constant 0 : i32
    %c0_i32_0 = arith.constant 0 : i32
    return %arg0, %c0_i32 : i32, i32
  }
}

</mosaic_0001>

<bundles_post_ra>
// kernel: net_forward.1
= control target key start
LH: loop header
LB: loop body
LE: loop exit
PB: predicated region body
PF: predicated region fallthrough
CT: control target
= control target key end

     0   :  { %v1179_v44 = vmov 0.0   ;;  %vm1180_vm0 = vmmov 0   ;;  %vm447_vm1 = vcmask 130048   ;;  %s1484_s0 = inlined_call_operand.vmem [shape: f32[8,784], index: 0, kind: input, shape index: {}]   ;;  %s1485_s1 = inlined_call_operand.vmem [shape: bf16[784,64], index: 1, kind: input, shape index: {}]   ;;  %s1486_s2 = inlined_call_operand.vmem [shape: f32[1,64], index: 2, kind: input, shape index: {}]   ;;  %s1487_s3 = inlined_call_operand.vmem [shape: bf16[64,64], index: 3, kind: input, shape index: {}]   ;;  %s1488_s4 = inlined_call_operand.vmem [shape: f32[1,64], index: 4, kind: input, shape index: {}]   ;;  %s1489_s5 = inlined_call_operand.vmem [shape: bf16[64,64], index: 5, kind: input, shape index: {}]   ;;  %s1490_s6 = inlined_call_operand.vmem [shape: f32[1,64], index: 6, kind: input, shape index: {}]   ;;  %s1491_s7 = inlined_call_operand.vmem [shape: bf16[64,128], index: 7, kind: input, shape index: {}]   ;;  %s1492_s8 = inlined_call_operand.vmem [shape: f32[1,128], index: 8, kind: input, shape index: {}]   ;;  %s1493_s9 = inlined_call_operand.hbm [shape: f32[8,128], index: 9, kind: output, shape index: {}]  }
   0x1   :  { %v1090_v0 = vld [vmem:[%s1485_s1 + $0x40] sm:$0xff]   ;;  %v1094_v4 = vld [vmem:[%s1485_s1 + $0x48] sm:$0xff]   ;;  %v1098_v8 = vld [vmem:[%s1485_s1 + $0x50] sm:$0xff]  }
   0x2   :  { %v1091_v1 = vld [vmem:[%s1485_s1] sm:$0xff]   ;;  %962 = vmatprep.subr.bf16.mxu0 %v1090_v0  ;;  %v1095_v5 = vld [vmem:[%s1485_s1 + $0x8] sm:$0xff]   ;;  %v1099_v9 = vld [vmem:[%s1485_s1 + $0x10] sm:$0xff]  }
   0x3   :  { %v1092_v2 = vld [vmem:[%s1485_s1 + $0xc0] sm:$0xff]   ;;  %963 = vmatpush3.bf16.msra.mxu0 %v1091_v1  ;;  %v1096_v6 = vld [vmem:[%s1485_s1 + $0xc8] sm:$0xff]   ;;  %v1100_v10 = vld [vmem:[%s1485_s1 + $0xd0] sm:$0xff]  }
   0x4   :  { %v1093_v3 = vld [vmem:[%s1485_s1 + $0x80] sm:$0xff]   ;;  %984 = vmatprep.subr.bf16.mxu1 %v1092_v2  ;;  %964 = vmatprep.subr.bf16.mxu0 %v1094_v4  ;;  %v1097_v7 = vld [vmem:[%s1485_s1 + $0x88] sm:$0xff]   ;;  %v1101_v11 = vld [vmem:[%s1485_s1 + $0x90] sm:$0xff]  }
   0x5   :  { %985 = vmatpush3.bf16.msra.mxu1 %v1093_v3  ;;  %v1102_v12 = vld [vmem:[%s1485_s1 + $0x58] sm:$0xff]   ;;  %v1106_v16 = vld [vmem:[%s1485_s1 + $0x60] sm:$0xff]   ;;  %v1110_v20 = vld [vmem:[%s1485_s1 + $0x68] sm:$0xff]  }
   0x6   :  { %986 = vmatprep.subr.bf16.mxu1 %v1096_v6  ;;  %v1103_v13 = vld [vmem:[%s1485_s1 + $0x18] sm:$0xff]   ;;  %v1107_v17 = vld [vmem:[%s1485_s1 + $0x20] sm:$0xff]   ;;  %v1111_v21 = vld [vmem:[%s1485_s1 + $0x28] sm:$0xff]  }
   0x7   :  { %965 = vmatpush3.bf16.msra.mxu0 %v1095_v5  ;;  %v1104_v14 = vld [vmem:[%s1485_s1 + $0xd8] sm:$0xff]   ;;  %v1108_v18 = vld [vmem:[%s1485_s1 + $0xe0] sm:$0xff]   ;;  %v1112_v22 = vld [vmem:[%s1485_s1 + $0xe8] sm:$0xff]  }
   0x8   :  { %966 = vmatprep.subr.bf16.mxu0 %v1098_v8  ;;  %v1105_v15 = vld [vmem:[%s1485_s1 + $0x98] sm:$0xff]   ;;  %v1109_v19 = vld [vmem:[%s1485_s1 + $0xa0] sm:$0xff]   ;;  %v1113_v23 = vld [vmem:[%s1485_s1 + $0xa8] sm:$0xff]  }
   0x9   :  { %987 = vmatpush3.bf16.msra.mxu1 %v1097_v7  ;;  %v1114_v24 = vld [vmem:[%s1485_s1 + $0x70] sm:$0xff]   ;;  %v1118_v28 = vld [vmem:[%s1485_s1 + $0x78] sm:$0xff]   ;;  %v35_v31 = vld [vmem:[%s1484_s0 + $0x8] sm:$0xff] }
   0xa   :  { %988 = vmatprep.subr.bf16.mxu1 %v1100_v10  ;;  %v1115_v25 = vld [vmem:[%s1485_s1 + $0x30] sm:$0xff]   ;;  %v1119_v29 = vld [vmem:[%s1485_s1 + $0x38] sm:$0xff]   ;;  %v42_v32 = vpack.c.bf16 %v35_v31, %v35_v31  ;;  %v34_v34 = vld [vmem:[%s1484_s0] sm:$0xff] }
   0xb   :  { %967 = vmatpush3.bf16.msra.mxu0 %v1099_v9  ;;  %v1116_v26 = vld [vmem:[%s1485_s1 + $0xf0] sm:$0xff]   ;;  %v1120_v30 = vld [vmem:[%s1485_s1 + $0xf8] sm:$0xff]   ;;  %v41_v35 = vpack.c.bf16 %v34_v34, %v34_v34  ;;  %v1122_v36 = vld [vmem:[%s1485_s1 + $0x140] sm:$0xff]  }
   0xc   :  { %968 = vmatprep.subr.bf16.mxu0 %v1102_v12  ;;  %v1117_v27 = vld [vmem:[%s1485_s1 + $0xb0] sm:$0xff]   ;;  %v1121_v33 = vld [vmem:[%s1485_s1 + $0xb8] sm:$0xff]   ;;  %483 = vmatprep.mubr.bf16.mxu0 %v42_v32  ;;  %v1123_v39 = vld [vmem:[%s1485_s1 + $0x100] sm:$0xff]  }
   0xd   :  { %989 = vmatpush3.bf16.msra.mxu1 %v1101_v11  ;;  %v37_v37 = vld [vmem:[%s1484_s0 + $0x18] sm:$0xff]  ;;  %v36_v40 = vld [vmem:[%s1484_s0 + $0x10] sm:$0xff]  ;;  %v1124_v42 = vld [vmem:[%s1485_s1 + $0x148] sm:$0xff]  }
   0xe   :  { %990 = vmatprep.subr.bf16.mxu1 %v1104_v14  ;;  %v44_v38 = vpack.c.bf16 %v37_v37, %v37_v37  ;;  %v43_v41 = vpack.c.bf16 %v36_v40, %v36_v40  ;;  %v1125_v43 = vld [vmem:[%s1485_s1 + $0x108] sm:$0xff]   ;;  %v1126_v45 = vld [vmem:[%s1485_s1 + $0x150] sm:$0xff]   ;;  %v1128_v47 = vld [vmem:[%s1485_s1 + $0x158] sm:$0xff]  }
   0xf   :  { %969 = vmatpush3.bf16.msra.mxu0 %v1103_v13  ;;  %v1127_v46 = vld [vmem:[%s1485_s1 + $0x110] sm:$0xff]   ;;  %v1129_v48 = vld [vmem:[%s1485_s1 + $0x118] sm:$0xff]   ;;  %v1130_v49 = vld [vmem:[%s1485_s1 + $0x160] sm:$0xff]  }
  0x10   :  { %970 = vmatprep.subr.bf16.mxu0 %v1106_v16  ;;  %523 = vmatprep.mubr.bf16.mxu1 %v44_v38  ;;  %v1131_v50 = vld [vmem:[%s1485_s1 + $0x120] sm:$0xff]   ;;  %v1132_v51 = vld [vmem:[%s1485_s1 + $0x168] sm:$0xff]   ;;  %v1134_v55 = vld [vmem:[%s1485_s1 + $0x170] sm:$0xff]  }
  0x11   :  { %991 = vmatpush3.bf16.msra.mxu1 %v1105_v15  ;;  %v1133_v52 = vld [vmem:[%s1485_s1 + $0x128] sm:$0xff]   ;;  %v1138_v53 = vld [vmem:[%s1485_s1 + $0x180] sm:$0xff]   ;;  %v40_v57 = vld [vmem:[%s1484_s0 + $0x30] sm:$0xff] }
  0x12   :  { %992 = vmatprep.subr.bf16.mxu1 %v1108_v18  ;;  %v39_v54 = vld [vmem:[%s1484_s0 + $0x28] sm:$0xff]  ;;  %v47_v58 = vpack.c.bf16 %v40_v57, %v40_v57  ;;  %v1135_v59 = vld [vmem:[%s1485_s1 + $0x130] sm:$0xff]   ;;  %v1136_v60 = vld [vmem:[%s1485_s1 + $0x178] sm:$0xff]  }
  0x13   :  { %971 = vmatpush3.bf16.msra.mxu0 %v1107_v17  ;;  %v46_v56 = vpack.c.bf16 %v39_v54, %v39_v54 }
  0x14   :  { %972 = vmatprep.subr.bf16.mxu0 %v1110_v20 }
  0x15   :  { %993 = vmatpush3.bf16.msra.mxu1 %v1109_v19 }
  0x16   :  { %994 = vmatprep.subr.bf16.mxu1 %v1112_v22 }
  0x17   :  { %973 = vmatpush3.bf16.msra.mxu0 %v1111_v21 }
  0x18   :  { %974 = vmatprep.subr.bf16.mxu0 %v1114_v24 }
  0x19   :  { %995 = vmatpush3.bf16.msra.mxu1 %v1113_v23 }
  0x1a   :  { %996 = vmatprep.subr.bf16.mxu1 %v1116_v26 }
  0x1b   :  { %975 = vmatpush3.bf16.msra.mxu0 %v1115_v25 }
  0x1c   :  { %976 = vmatprep.subr.bf16.mxu0 %v1118_v28 }
  0x1d   :  { %997 = vmatpush3.bf16.msra.mxu1 %v1117_v27 }
  0x1e   :  { %998 = vmatprep.subr.bf16.mxu1 %v1120_v30 }
  0x1f   :  { %977 = vmatpush3.bf16.msra.mxu0 %v1119_v29 }
  0x20   :  { %1006 = vmatprep.subr.bf16.mxu0 %v1122_v36 }
  0x21   :  { %999 = vmatpush3.bf16.msra.mxu1 %v1121_v33 }
  0x22   :  { %484 = vmatmul.mubr.bf16.vlgmr.msra.gmra.mrb[0].mxu0 %v41_v35  ;;  %1045 = vmatprep.subr.bf16.mxu1 %v1179_v44 }
  0x23   :  { %1007 = vmatpush3.bf16.msra.mxu0 %v1123_v39  ;;  %563 = vmatprep.mubr.bf16.mxu0 %v46_v56 }
  0x24   :  { %524 = vmatmul.mubr.bf16.vlgmr.msra.gmra.mrb[0].mxu1 %v43_v41  ;;  %1008 = vmatprep.subr.bf16.mxu0 %v1124_v42 }
  0x25   :  { %1047 = vmatprep.mubr.msk.bf16.mxu1 %vm1180_vm0, %v1179_v44  ;;  %1046 = vmatpush3.bf16.msra.mxu1 %v1138_v53 }
  0x26   :  { %1051 = vmatprep.subr.bf16.mxu1 %v1179_v44 }
  0x27   :  { %1009 = vmatpush3.bf16.msra.mxu0 %v1125_v43 }
  0x28   :  { %1010 = vmatprep.subr.bf16.mxu0 %v1126_v45 }
  0x2b   :  { %1011 = vmatpush3.bf16.msra.mxu0 %v1127_v46 }
  0x2c   :  { %1012 = vmatprep.subr.bf16.mxu0 %v1128_v47  ;;  %1048 = vmatmul.mubr.msk.bf16.vlgmr.msra.gmra.mrb[4].mxu1 %vm447_vm1, %v47_v58 }
  0x2d   :  { %1059 = vmatprep.mubr.msk.bf16.mxu1 %vm1180_vm0, %v1179_v44 }
  0x2f   :  { %1013 = vmatpush3.bf16.msra.mxu0 %v1129_v48 }
  0x30   :  { %1014 = vmatprep.subr.bf16.mxu0 %v1130_v49 }
  0x33   :  { %1015 = vmatpush3.bf16.msra.mxu0 %v1131_v50 }
  0x34   :  { %1016 = vmatprep.subr.bf16.mxu0 %v1132_v51 }
  0x37   :  { %1017 = vmatpush3.bf16.msra.mxu0 %v1133_v52 }
  0x38   :  { %1018 = vmatprep.subr.bf16.mxu0 %v1134_v55 }
  0x39   :  { %14 = vsyncpa [#allocation3], 0  ;;  %v1137_v61 = vld [vmem:[%s1485_s1 + $0x138] sm:$0xff]   ;;  %v38_v62 = vld [vmem:[%s1484_s0 + $0x20] sm:$0xff]  ;;  %vm652_vm2 = vcmask 523264   ;;  %v864_v55 = vlaneseq }
  0x3a   :  { %v45_v63 = vpack.c.bf16 %v38_v62, %v38_v62  ;;  %v1139_v0 = vld [vmem:[%s1487_s3] sm:$0xff]   ;;  %v1140_v1 = vld [vmem:[%s1487_s3 + $0x8] sm:$0xff]   ;;  %v1141_v2 = vld [vmem:[%s1487_s3 + $0x10] sm:$0xff]  }
  0x3b   :  { %1019 = vmatpush3.bf16.msra.mxu0 %v1135_v59  ;;  %1052 = vmatpush3.bf16.msra.mxu1 %v1139_v0  ;;  %v1142_v3 = vld [vmem:[%s1487_s3 + $0x18] sm:$0xff]   ;;  %v893_v5 = vld [vmem:[%s1486_s2] ss:$0 sm:$0xff]  ;;  %v1144_v31 = vld [vmem:[%s1489_s5 + $0x8] sm:$0xff]  }
  0x3c   :  { %1020 = vmatprep.subr.bf16.mxu0 %v1136_v60  ;;  %1053 = vmatprep.subr.bf16.mxu1 %v1179_v44  ;;  %v1143_v29 = vld [vmem:[%s1489_s5] sm:$0xff]   ;;  %v1145_v32 = vld [vmem:[%s1489_s5 + $0x10] sm:$0xff]   ;;  %v1146_v33 = vld [vmem:[%s1489_s5 + $0x18] sm:$0xff]  }
  0x3d   :  { %v1147_v34 = vld [vmem:[%s1491_s7] sm:$0xff]   ;;  %v1148_v35 = vld [vmem:[%s1491_s7 + $0x8] sm:$0xff]   ;;  %v1149_v45 = vld [vmem:[%s1491_s7 + $0x10] sm:$0xff]  }
  0x3e   :  { %v944_v36 = vld [vmem:[%s1488_s4] ss:$0 sm:$0xff]  ;;  %v1150_v46 = vld [vmem:[%s1491_s7 + $0x18] sm:$0xff]  }
  0x3f   :  { %1021 = vmatpush3.bf16.msra.mxu0 %v1137_v61  ;;  %1054 = vmatpush3.bf16.msra.mxu1 %v1140_v1  ;;  %v950_v47 = vld [vmem:[%s1490_s6] ss:$0 sm:$0xff]  ;;  %s1181_s6 = smov [#allocation2]  }
  0x40   :  { %1075 = vmatprep.subr.bf16.mxu0 %v1179_v44  ;;  %1055 = vmatprep.subr.bf16.mxu1 %v1179_v44  ;;  %v956_v56 = vld [vmem:[%s1492_s8] ss:$0 sm:$0xff]  ;;  %s885_s7 = sshll.u32 %s1181_s6, 4  ;;  %s886_s7 = int_to_ptr.vmem [resolvable:$true] %s885_s7 }
  0x41   :  { %s1155_s8 = scalar_lea.vmem %s886_s7, 128  ;;  %p1160_p1 = scmp.lt.s32.totalorder %s886_s7, %s886_s7 }
  0x42   :  { %564 = vmatmul.mubr.bf16.vlgmr.msra.gmra.mrb[4].mxu0 %v45_v63  ;;  %p1156_p0 = scmp.ne.s32.totalorder %s886_s7, %s1155_s8  ;;  %p1161_p2 = scmp.lt.s32.totalorder %s1155_s8, %s1155_s8 }
  0x43   :  { %1083 = vmatprep.mubr.msk.bf16.mxu0 %vm1180_vm0, %v1179_v44  ;;  %1056 = vmatpush3.bf16.msra.mxu1 %v1141_v2 }
  0x44   :  { %1057 = vmatprep.subr.bf16.mxu1 %v1179_v44  ;;  %1076 = vmatpush3.bf16.msra.mxu0 %v1147_v34  ;;  %p1162_p3 = por %p1161_p2, %p1160_p1 }
  0x45   :  { %1077 = vmatprep.subr.bf16.mxu0 %v1179_v44 }
  0x46   :  { %p1163_p4 = pnand %p1162_p3, %p1156_p0 }
  0x47   :  { %1058 = vmatpush3.bf16.msra.mxu1 %v1142_v3 }
  0x48   :  { %1063 = vmatprep.subr.bf16.mxu1 %v1179_v44  ;;  %1078 = vmatpush3.bf16.msra.mxu0 %v1148_v35 }
  0x49   :  { %1079 = vmatprep.subr.bf16.mxu0 %v1179_v44 }
  0x4c   :  { %1080 = vmatpush3.bf16.msra.mxu0 %v1149_v45 }
  0x4d   :  { %1081 = vmatprep.subr.bf16.mxu0 %v1179_v44 }
  0x50   :  { %1082 = vmatpush3.bf16.msra.mxu0 %v1150_v46 }
  0xf5   :  { %v978_v4 = vpop.f32.mrb[0].mxu0 }
  0xf6   :  { %v979_v6 = vpop.f32.mrb[1].mxu0 }
  0xf7   :  { %v980_v7 = vadd.f32 %v979_v6, %v978_v4  ;;  %v981_v8 = vpop.f32.mrb[2].mxu0  ;;  %v1000_v9 = vpop.f32.mrb[0].mxu1 }
  0xf8   :  { %v982_v10 = vpop.f32.mrb[3].mxu0  ;;  %v1001_v12 = vpop.f32.mrb[1].mxu1 }
  0xf9   :  { %v486_v11 = vadd.f32 %v980_v7, %v893_v5  ;;  %v1002_v13 = vadd.f32 %v1001_v12, %v1000_v9  ;;  %v1003_v14 = vpop.f32.mrb[2].mxu1 }
  0xfa   :  { %v1004_v15 = vpop.f32.mrb[3].mxu1 }
  0xfb   :  { %v526_v16 = vadd.f32 %v1002_v13, %v486_v11 }
  0xff   :  { %v605_v17 = vpop.f32.mrb[4].mxu1 }
 0x100   :  { %v1049_v18 = vpop.f32.mrb[5].mxu1 }
 0x101   :  { %v608_v19 = vpop.f32.mrb[6].mxu1 }
 0x102   :  { %v1050_v20 = vpop.f32.mrb[7].mxu1 }
 0x115   :  { %v1022_v21 = vpop.f32.mrb[4].mxu0 }
 0x116   :  { %v1023_v22 = vpop.f32.mrb[5].mxu0 }
 0x117   :  { %v1024_v23 = vadd.f32 %v1023_v22, %v1022_v21  ;;  %v1025_v24 = vpop.f32.mrb[6].mxu0 }
 0x118   :  { %v1026_v25 = vpop.f32.mrb[7].mxu0 }
 0x119   :  { %v566_v26 = vadd.f32 %v1024_v23, %v526_v16 }
 0x11b   :  { %v606_v27 = vadd.f32 %v605_v17, %v566_v26 }
 0x11d   :  { %v611_v28 = vmax.f32 %v606_v27, 0.0 }
 0x11f   :  { %v612_v30 = vpack.c.bf16 %v611_v28, %v611_v28 }
 0x121   :  { %1060 = vmatmul.mubr.msk.bf16.vlgmr.msra.gmra.mrb[8].mxu1 %vm652_vm2, %v612_v30 }
 0x122   :  { %1064 = vmatpush3.bf16.msra.mxu1 %v1143_v29  ;;  %1071 = vmatprep.mubr.msk.bf16.mxu1 %vm1180_vm0, %v1179_v44 }
 0x123   :  { %1065 = vmatprep.subr.bf16.mxu1 %v1179_v44 }
 0x126   :  { %1066 = vmatpush3.bf16.msra.mxu1 %v1144_v31 }
 0x127   :  { %1067 = vmatprep.subr.bf16.mxu1 %v1179_v44 }
 0x12a   :  { %1068 = vmatpush3.bf16.msra.mxu1 %v1145_v32 }
 0x12b   :  { %1069 = vmatprep.subr.bf16.mxu1 %v1179_v44  ;;  %v865_v44 = vand.u32 127, %v864_v55 }
 0x12d   :  { %vm866_vm3 = vcmp.lt.s32.totalorder %v865_v44, 10 }
 0x12e   :  { %1070 = vmatpush3.bf16.msra.mxu1 %v1146_v33 }
 0x1f4   :  { %v690_v37 = vpop.f32.mrb[8].mxu1 }
 0x1f5   :  { %v691_v38 = vadd.f32 %v944_v36, %v690_v37  ;;  %v1061_v39 = vpop.f32.mrb[9].mxu1 }
 0x1f6   :  { %v693_v40 = vpop.f32.mrb[10].mxu1 }
 0x1f7   :  { %v696_v41 = vmax.f32 %v691_v38, 0.0  ;;  %v1062_v42 = vpop.f32.mrb[11].mxu1 }
 0x1f9   :  { %v697_v43 = vpack.c.bf16 %v696_v41, %v696_v41 }
 0x1fb   :  { %1072 = vmatmul.mubr.msk.bf16.vlgmr.msra.gmra.mrb[12].mxu1 %vm652_vm2, %v697_v43 }
 0x2ce   :  { %v774_v48 = vpop.f32.mrb[12].mxu1 }
 0x2cf   :  { %v775_v49 = vadd.f32 %v950_v47, %v774_v48  ;;  %v1073_v50 = vpop.f32.mrb[13].mxu1 }
 0x2d0   :  { %v777_v51 = vpop.f32.mrb[14].mxu1 }
 0x2d1   :  { %v780_v52 = vmax.f32 %v775_v49, 0.0  ;;  %v1074_v53 = vpop.f32.mrb[15].mxu1 }
 0x2d3   :  { %v781_v54 = vpack.c.bf16 %v780_v52, %v780_v52 }
 0x2d5   :  { %1084 = vmatmul.mubr.msk.bf16.vlgmr.msra.gmra.mrb[8].mxu0 %vm652_vm2, %v781_v54 }
 0x3a8   :  { %v858_v57 = vpop.f32.mrb[8].mxu0 }
 0x3a9   :  { %v859_v58 = vadd.f32 %v956_v56, %v858_v57  ;;  %v1085_v59 = vpop.f32.mrb[9].mxu0 }
 0x3aa   :  { %v861_v60 = vpop.f32.mrb[10].mxu0 }
 0x3ab   :  { %v1086_v61 = vpop.f32.mrb[11].mxu0  ;;  %v867_v62 = vsel %vm866_vm3, %v859_v58, -1e+30 }
 0x3ac   :  { %868 = vmax.xlane.f32.xlu0 %v867_v62 }
 0x439   :  { %v869_v63 = vpop.xlane.xlu0 %868 }
 0x43a   :  { %v870_v0 = vsub.f32 %v867_v62, %v869_v63 }
 0x43c   :  { %v871_v1 = vmul.f32 1.442695, %v870_v0 }
 0x43e   :  { %1151 = vpow2.f32 %v871_v1 }
 0x448   :  { %v1152_v2 = vpop.eup %1151 }
 0x449   :  { %873 = vadd.xlane.f32.xlu0 %v1152_v2 }
 0x4d6   :  { %v874_v3 = vpop.xlane.xlu0 %873 }
 0x4d7   :  { %1153 = vlog2.f32 %v874_v3 }
 0x4e1   :  { %v1154_v4 = vpop.eup %1153 }
 0x4e2   :  { %v876_v5 = vmul.f32 0.6931472, %v1154_v4 }
 0x4e4   :  { %v877_v6 = vsub.f32 %v870_v0, %v876_v5 }
 0x4e6   :  { %878 = vst [vmem:[#allocation2] sm:$0xff] %v877_v6 }
 0x4e7   :  { %1166 = shalt.err (!%p1163_p4)
}
 0x4e8   :  { %s1167_s21 = scalar_lea.hbm %s1493_s9, 128 }
 0x4e9   :  { %p1168_p5 = scmp.ne.s32.totalorder %s1493_s9, %s1167_s21  ;;  %p1171_p6 = scmp.lt.u32.totalorder %s1167_s21, %s1493_s9 }
 0x4eb   :  { %p1173_p7 = pnand %p1171_p6, %p1168_p5 }
 0x4ed   :  { %1176 = shalt.err (!%p1173_p7)
}
 0x4ee   :  { %888 = dma.vmem_to_hbm [thread:$0]  %s886_s7, 128, %s1493_s9, [#allocation3]  }
 0x4ef   :  { %1177 = dma.done.wait [#allocation3], 128  }
 0x4f0   :  { %1178 = vsyncadd [#allocation3], 4294967168 }
 0x4f1   :  { %892 = vsyncpa [#allocation3], 1 }

</bundles_post_ra>
